<compile_context>
chip_gen: v6e
topology: v6e:2x2x1
jax: 0.10.0
libtpu: 0.0.40
codegen_flags: <defaults>
</compile_context>

<pallas_src>
from functools import lru_cache, partial

import numpy as np
import jax
import jax.numpy as jnp
from jax.experimental import pallas as pl
from jax.experimental.pallas import tpu as pltpu


def _round_up(v, m):
    return -(-v // m) * m


def _vmem_caps():
    """Generation-aware (data-block budget bytes, vmem_limit_bytes)."""
    phys = 64 * 1024 * 1024                       # conservative default (v7x per-TC VMEM)
    try:
        cap = getattr(pltpu.get_tpu_info(), "vmem_capacity_bytes", None)
        if cap:
            phys = int(cap)
    except Exception:
        pass
    vmem_limit = min(phys * 3 // 4, 96 * 1024 * 1024)   # v5e/v6e ~96 MiB, v7x ~48 MiB
    budget = vmem_limit * 3 // 4                        # headroom for compiler scratch
    return budget, vmem_limit


def _choose_tc(N, C, budget_bytes, block_bytes_fn, shape_ok_fn):
    """Largest channel block (divisor of C) obeying the (8,128) sublane rule and the
    VMEM budget; only shrink to keep >= 4 total grid points (2 per v7x TensorCore),
    then >= 2, for pipelining / megacore sharding."""
    divisors = [d for d in range(1, C + 1) if C % d == 0]
    shape_ok = [d for d in divisors if shape_ok_fn(d)]        # always contains C
    fits = [d for d in shape_ok if block_bytes_fn(d) <= budget_bytes]
    if not fits:
        fits = [min(shape_ok)]                                # rely on vmem_limit headroom
    for min_points in (4, 2, 1):
        tier = [d for d in fits if N * (C // d) >= min_points]
        if tier:
            return max(tier)
    return max(fits)


@lru_cache(maxsize=None)
def _sel_dense(H, W, scale, dtype_name):
    """sel[q, h*W + w, hh*Wo + ww] = 1 iff h == hh*s + q//s and w == ww*s + q%s."""
    Ho, Wo = H // scale, W // scale
    q = np.arange(scale * scale)[:, None, None]
    p_in = np.arange(H * W)[None, :, None]
    p_out = np.arange(Ho * Wo)[None, None, :]
    sel = ((p_in // W == (p_out // Wo) * scale + q // scale)
           & (p_in % W == (p_out % Wo) * scale + q % scale))
    return jnp.asarray(sel.astype(dtype_name))


@lru_cache(maxsize=None)
def _sel_rows(W, scale, dtype_name):
    """sel[i*W + w, (i*s + j)*Wo + ww] = 1 iff w == ww*s + j (zero rows otherwise)."""
    Wo = W // scale
    r = np.arange(scale * W)[:, None]
    col = np.arange(scale * scale * Wo)[None, :]
    q = col // Wo
    sel = (r // W == q // scale) & (r % W == (col % Wo) * scale + q % scale)
    return jnp.asarray(sel.astype(dtype_name))


def _reorg_kernel_dense(x_ref, sel_ref, o_ref, *, ssq):
    # x_ref  : (1, tc, H*W)         rows = c, lanes = h*W + w
    # sel_ref: (s*s, H*W, Ho*Wo)    leading-dim indexed (cheap, tile-aligned)
    # o_ref  : (1, s*s, tc, Ho*Wo)  full-slab, lane-dense stores
    x = x_ref[0]                                            # (tc, H*W)
    for q in range(ssq):
        o_ref[0, q, :, :] = jnp.dot(
            x, sel_ref[q], preferred_element_type=jnp.float32
        ).astype(o_ref.dtype)


def _reorg_kernel_rows(x_ref, sel_ref, o_ref, *, ssq, Wo):
    # x_ref  : (1, tc*Ho, s*W)      rows = (c, hh), lanes = (i, w)
    # sel_ref: (s*W, s*s*Wo)        all row+col phases fused -> one MXU matmul
    # o_ref  : (1, s*s, tc*Ho, Wo)
    y = jnp.dot(x_ref[0], sel_ref[...], preferred_element_type=jnp.float32)
    for q in range(ssq):
        o_ref[0, q, :, :] = y[:, q * Wo:(q + 1) * Wo].astype(o_ref.dtype)


def reorganize(x, scale, *, _force_row_layout=False):
    """Pallas TPU implementation of ReOrganize.forward (NCHW input)."""
    if scale == 1:
        return x
    N, C, H, W = x.shape
    assert H % scale == 0 and W % scale == 0, "H and W must be divisible by scale"
    # TODO(synk): integer/bool dtypes need a non-matmul gather path.
    assert jnp.issubdtype(x.dtype, jnp.floating), (
        "matmul-gather path supports floating dtypes only")

    Ho, Wo = H // scale, W // scale
    ssq = scale * scale
    HW, HoWo = H * W, Ho * Wo
    itemsize = jnp.dtype(x.dtype).itemsize
    dtype_name = jnp.dtype(x.dtype).name
    budget, vmem_limit = _vmem_caps()
    cparams = pltpu.CompilerParams(
        dimension_semantics=("parallel", "parallel"),
        vmem_limit_bytes=vmem_limit)

    # Double-buffered, padded VMEM footprint of the dense selection tensor.
    sel_dense_bytes = 2 * ssq * _round_up(HW, 8) * _round_up(HoWo, 128) * itemsize

    if not _force_row_layout and sel_dense_bytes <= budget // 2:
        # ---------------- primary path: per-channel, lane-dense output ----------------
        def block_bytes(tc):
            rows = _round_up(tc, 8)
            in_b = 2 * rows * _round_up(HW, 128) * itemsize
            out_b = 2 * ssq * rows * _round_up(HoWo, 128) * itemsize
            return in_b + out_b + sel_dense_bytes

        tc = _choose_tc(N, C, budget, block_bytes,
                        lambda d: d == C or d % 8 == 0)

        xr = x.reshape(N, C, HW)                             # metadata-only view
        sel = _sel_dense(H, W, scale, dtype_name)
        out = pl.pallas_call(
            partial(_reorg_kernel_dense, ssq=ssq),
            out_shape=jax.ShapeDtypeStruct((N, ssq, C, HoWo), x.dtype),
            grid=(N, C // tc),
            in_specs=[
                pl.BlockSpec((1, tc, HW), lambda n, bc: (n, bc, 0)),
                pl.BlockSpec((ssq, HW, HoWo), lambda n, bc: (0, 0, 0)),
            ],
            out_specs=pl.BlockSpec((1, ssq, tc, HoWo), lambda n, bc: (n, 0, bc, 0)),
            compiler_params=cparams,
        )(xr, sel)
        return out.reshape(N, ssq * C, Ho, Wo)               # metadata-only reshape

    # ------- fallback (large spatial maps): (c,hh)-row layout, single fused matmul -------
    def block_bytes(tc):
        rows = _round_up(tc * Ho, 8)
        in_b = 2 * rows * _round_up(scale * W, 128) * itemsize
        out_b = 2 * ssq * rows * _round_up(Wo, 128) * itemsize
        sel_b = 2 * _round_up(scale * W, 8) * _round_up(ssq * Wo, 128) * itemsize
        return in_b + out_b + sel_b

    tc = _choose_tc(N, C, budget, block_bytes,
                    lambda d: d == C or (d * Ho) % 8 == 0)

    xr = x.reshape(N, C * Ho, scale * W)                     # metadata-only view
    sel = _sel_rows(W, scale, dtype_name)
    out = pl.pallas_call(
        partial(_reorg_kernel_rows, ssq=ssq, Wo=Wo),
        out_shape=jax.ShapeDtypeStruct((N, ssq, C * Ho, Wo), x.dtype),
        grid=(N, C // tc),
        in_specs=[
            pl.BlockSpec((1, tc * Ho, scale * W), lambda n, bc: (n, bc, 0)),
            pl.BlockSpec((scale * W, ssq * Wo), lambda n, bc: (0, 0)),
        ],
        out_specs=pl.BlockSpec((1, ssq, tc * Ho, Wo), lambda n, bc: (n, 0, bc, 0)),
        compiler_params=cparams,
    )(xr, sel)
    return out.reshape(N, ssq * C, Ho, Wo)


def reorganize_ref(x, s):
    """Pure-JAX reference (mirrors the PyTorch view/transpose chain)."""
    N, C, H, W = x.shape
    Ho, Wo = H // s, W // s
    y = x.reshape(N, C, Ho, s, Wo, s)
    y = jnp.transpose(y, (0, 3, 5, 1, 2, 4))   # (N, s, s, C, Ho, Wo)
    return y.reshape(N, s * s * C, Ho, Wo)


if __name__ == "__main__":
    scale = 2

    # Test 1: small shapes consistent with the module (lane-dense primary path).
    N, C, H, W = 2, 4, 16, 16
    x = jax.random.normal(jax.random.PRNGKey(0), (N, C, H, W), dtype=jnp.float32)
    out = jax.block_until_ready(reorganize(x, scale))
    assert out.shape == (N, scale * scale * C, H // scale, W // scale)
    assert out.dtype == x.dtype
    assert jnp.array_equal(out, reorganize_ref(x, scale)), "mismatch vs reference (test 1)"

    # Test 2: batch 1, more channels -> exercises the C-tiled grid (tc < C).
    x2 = jax.random.normal(jax.random.PRNGKey(1), (1, 16, 16, 16), dtype=jnp.float32)
    out2 = jax.block_until_ready(reorganize(x2, scale))
    assert jnp.array_equal(out2, reorganize_ref(x2, scale)), "mismatch vs reference (test 2)"

    # Test 3: force the large-spatial fallback (row layout, single fused matmul).
    out3 = jax.block_until_ready(reorganize(x, scale, _force_row_layout=True))
    assert jnp.array_equal(out3, reorganize_ref(x, scale)), "mismatch vs reference (test 3)"

    print("KERNEL_OK")
</pallas_src>

<mosaic_0001>
module attributes {stable_mosaic.version = 11 : i64} {
  func.func @_reorg_kernel_dense(%arg0: i32, %arg1: i32, %arg2: memref<1x4x256xf32, #tpu.memory_space<vmem>>, %arg3: memref<4x256x64xf32, #tpu.memory_space<vmem>>, %arg4: memref<1x4x4x64xf32, #tpu.memory_space<vmem>>) attributes {dimension_semantics = [#tpu.dimension_semantics<parallel>, #tpu.dimension_semantics<parallel>], iteration_bounds = array<i64: 2, 1>, scalar_prefetch = 0 : i64, scratch_operands = 0 : i64, tpu.core_type = #tpu.core_type<tc>, window_params = [{transform_indices = @transform_0, window_bounds = array<i64: 1, 4, 256>}, {pipeline_mode = #tpu.pipeline_mode<synchronous>, transform_indices = @transform_1, window_bounds = array<i64: 4, 256, 64>}, {transform_indices = @transform_2, window_bounds = array<i64: 1, 4, 4, 64>}]} {
    %c0 = arith.constant 0 : index
    %c0_0 = arith.constant 0 : index
    %c0_1 = arith.constant 0 : index
    %0 = vector.load %arg2[%c0, %c0_0, %c0_1] : memref<1x4x256xf32, #tpu.memory_space<vmem>>, vector<1x4x256xf32>
    %1 = vector.shape_cast %0 : vector<1x4x256xf32> to vector<4x256xf32>
    %c0_2 = arith.constant 0 : index
    %c0_3 = arith.constant 0 : index
    %c0_4 = arith.constant 0 : index
    %2 = vector.load %arg3[%c0_2, %c0_3, %c0_4] : memref<4x256x64xf32, #tpu.memory_space<vmem>>, vector<1x256x64xf32>
    %3 = vector.shape_cast %2 : vector<1x256x64xf32> to vector<256x64xf32>
    %cst = arith.constant dense<0.000000e+00> : vector<4x64xf32>
    %4 = tpu.matmul %1, %3, %cst {dimension_numbers = #tpu.dot_dimension_numbers<[1], [0], [0], [1], [0, 0, 1, 1], [], []>} : vector<4x256xf32>, vector<256x64xf32>, vector<4x64xf32> -> vector<4x64xf32>
    %c0_5 = arith.constant 0 : index
    %c0_6 = arith.constant 0 : index
    %c0_7 = arith.constant 0 : index
    %c0_8 = arith.constant 0 : index
    %5 = vector.load %arg4[%c0_5, %c0_6, %c0_7, %c0_8] : memref<1x4x4x64xf32, #tpu.memory_space<vmem>>, vector<1x1x4x64xf32>
    %6 = vector.shape_cast %5 : vector<1x1x4x64xf32> to vector<4x64xf32>
    %7 = vector.shape_cast %4 : vector<4x64xf32> to vector<1x1x4x64xf32>
    tpu.vector_store %arg4[%c0_5, %c0_6, %c0_7, %c0_8], %7 {strides = array<i32>} : memref<1x4x4x64xf32, #tpu.memory_space<vmem>>, vector<1x1x4x64xf32>,
    %c1 = arith.constant 1 : index
    %c0_9 = arith.constant 0 : index
    %c0_10 = arith.constant 0 : index
    %8 = vector.load %arg3[%c1, %c0_9, %c0_10] : memref<4x256x64xf32, #tpu.memory_space<vmem>>, vector<1x256x64xf32>
    %9 = vector.shape_cast %8 : vector<1x256x64xf32> to vector<256x64xf32>
    %cst_11 = arith.constant dense<0.000000e+00> : vector<4x64xf32>
    %10 = tpu.matmul %1, %9, %cst_11 {dimension_numbers = #tpu.dot_dimension_numbers<[1], [0], [0], [1], [0, 0, 1, 1], [], []>} : vector<4x256xf32>, vector<256x64xf32>, vector<4x64xf32> -> vector<4x64xf32>
    %c0_12 = arith.constant 0 : index
    %c1_13 = arith.constant 1 : index
    %c0_14 = arith.constant 0 : index
    %c0_15 = arith.constant 0 : index
    %11 = vector.load %arg4[%c0_12, %c1_13, %c0_14, %c0_15] : memref<1x4x4x64xf32, #tpu.memory_space<vmem>>, vector<1x1x4x64xf32>
    %12 = vector.shape_cast %11 : vector<1x1x4x64xf32> to vector<4x64xf32>
    %13 = vector.shape_cast %10 : vector<4x64xf32> to vector<1x1x4x64xf32>
    tpu.vector_store %arg4[%c0_12, %c1_13, %c0_14, %c0_15], %13 {strides = array<i32>} : memref<1x4x4x64xf32, #tpu.memory_space<vmem>>, vector<1x1x4x64xf32>,
    %c2 = arith.constant 2 : index
    %c0_16 = arith.constant 0 : index
    %c0_17 = arith.constant 0 : index
    %14 = vector.load %arg3[%c2, %c0_16, %c0_17] : memref<4x256x64xf32, #tpu.memory_space<vmem>>, vector<1x256x64xf32>
    %15 = vector.shape_cast %14 : vector<1x256x64xf32> to vector<256x64xf32>
    %cst_18 = arith.constant dense<0.000000e+00> : vector<4x64xf32>
    %16 = tpu.matmul %1, %15, %cst_18 {dimension_numbers = #tpu.dot_dimension_numbers<[1], [0], [0], [1], [0, 0, 1, 1], [], []>} : vector<4x256xf32>, vector<256x64xf32>, vector<4x64xf32> -> vector<4x64xf32>
    %c0_19 = arith.constant 0 : index
    %c2_20 = arith.constant 2 : index
    %c0_21 = arith.constant 0 : index
    %c0_22 = arith.constant 0 : index
    %17 = vector.load %arg4[%c0_19, %c2_20, %c0_21, %c0_22] : memref<1x4x4x64xf32, #tpu.memory_space<vmem>>, vector<1x1x4x64xf32>
    %18 = vector.shape_cast %17 : vector<1x1x4x64xf32> to vector<4x64xf32>
    %19 = vector.shape_cast %16 : vector<4x64xf32> to vector<1x1x4x64xf32>
    tpu.vector_store %arg4[%c0_19, %c2_20, %c0_21, %c0_22], %19 {strides = array<i32>} : memref<1x4x4x64xf32, #tpu.memory_space<vmem>>, vector<1x1x4x64xf32>,
    %c3 = arith.constant 3 : index
    %c0_23 = arith.constant 0 : index
    %c0_24 = arith.constant 0 : index
    %20 = vector.load %arg3[%c3, %c0_23, %c0_24] : memref<4x256x64xf32, #tpu.memory_space<vmem>>, vector<1x256x64xf32>
    %21 = vector.shape_cast %20 : vector<1x256x64xf32> to vector<256x64xf32>
    %cst_25 = arith.constant dense<0.000000e+00> : vector<4x64xf32>
    %22 = tpu.matmul %1, %21, %cst_25 {dimension_numbers = #tpu.dot_dimension_numbers<[1], [0], [0], [1], [0, 0, 1, 1], [], []>} : vector<4x256xf32>, vector<256x64xf32>, vector<4x64xf32> -> vector<4x64xf32>
    %c0_26 = arith.constant 0 : index
    %c3_27 = arith.constant 3 : index
    %c0_28 = arith.constant 0 : index
    %c0_29 = arith.constant 0 : index
    %23 = vector.load %arg4[%c0_26, %c3_27, %c0_28, %c0_29] : memref<1x4x4x64xf32, #tpu.memory_space<vmem>>, vector<1x1x4x64xf32>
    %24 = vector.shape_cast %23 : vector<1x1x4x64xf32> to vector<4x64xf32>
    %25 = vector.shape_cast %22 : vector<4x64xf32> to vector<1x1x4x64xf32>
    tpu.vector_store %arg4[%c0_26, %c3_27, %c0_28, %c0_29], %25 {strides = array<i32>} : memref<1x4x4x64xf32, #tpu.memory_space<vmem>>, vector<1x1x4x64xf32>,
    return
  }
  func.func @transform_0(%arg0: i32, %arg1: i32) -> (i32, i32, i32) {
    %c0_i32 = arith.constant 0 : i32
    %c0_i32_0 = arith.constant 0 : i32
    return %arg0, %arg1, %c0_i32 : i32, i32, i32
  }
  func.func @transform_1(%arg0: i32, %arg1: i32) -> (i32, i32, i32) {
    %c0_i32 = arith.constant 0 : i32
    %c0_i32_0 = arith.constant 0 : i32
    %c0_i32_1 = arith.constant 0 : i32
    %c0_i32_2 = arith.constant 0 : i32
    return %c0_i32, %c0_i32_0, %c0_i32_1 : i32, i32, i32
  }
  func.func @transform_2(%arg0: i32, %arg1: i32) -> (i32, i32, i32, i32) {
    %c0_i32 = arith.constant 0 : i32
    %c0_i32_0 = arith.constant 0 : i32
    %c0_i32_1 = arith.constant 0 : i32
    return %arg0, %c0_i32, %arg1, %c0_i32_0 : i32, i32, i32, i32
  }
}

</mosaic_0001>

<bundles_post_ra>
// kernel: tpu_custom_call.1
= control target key start
LH: loop header
LB: loop body
LE: loop exit
PB: predicated region body
PF: predicated region fallthrough
CT: control target
= control target key end

     0   :  { %7 = vsyncpa [#allocation3], 0  ;;  %s1618_s0 = inlined_call_operand.vmem [shape: f32[2,4,256], index: 0, kind: input, shape index: {}]   ;;  %s1619_s1 = inlined_call_operand.vmem [shape: f32[4,256,64], index: 1, kind: input, shape index: {}]   ;;  %s1620_s2 = inlined_call_operand.hbm [shape: f32[2,4,4,64], index: 2, kind: output, shape index: {}]  }
   0x1   :  { %9 = vsyncpa [#allocation3 + $0x1], 0  ;;  %s1097_s9 = smov 0   ;;  %s1099_s10 = smov 0  }
   0x2   :  { %s1101_s11 = smov 0   ;;  %s1103_s12 = smov 0  }
   0x3   :  { %s1105_s13 = smov 0   ;;  %s1107_s14 = smov 0  }
   0x4 LB: > { %s689_s15 = sadd.s32 4294967295, %s1077_s14   ;;  %s690_s16 = sadd.s32 4294967294, %s1077_s14   ;;  %s1077_s14 = sphi %s1107_s14, %s15_s14   ;;  %s1073_s13 = sphi %s1105_s13, %s1627_s13   ;;  %s1069_s12 = sphi %s1103_s12, %s1626_s12   ;;  %s1065_s11 = sphi %s1101_s11, %s1625_s11   ;;  %s1061_s10 = sphi %s1099_s10, %s1624_s10   ;;  %s1057_s9 = sphi %s1097_s9, %s1623_s9  }
   0x5   : > { %s27_s17 = sadd.s32 1, %s1073_s13  ;;  %s85_s18 = sadd.s32 1, %s1065_s11 }
   0x6   : > { %p29_p0 = scmp.ge.s32.totalorder %s27_s17, 2  ;;  %p95_p1 = scmp.ne.s32.totalorder %s1065_s11, %s1061_s10 }
   0x7   : > { %p96_p2 = scmp.eq.s32.totalorder %s689_s15, 1  ;;  %p101_p3 = scmp.ne.s32.totalorder %s1061_s10, %s1057_s9 }
   0x8   : > { %s1629_s17 = smov (%p29_p0, %s27_s17), 0  ;;  %p102_p5 = scmp.eq.s32.totalorder %s690_s16, 1 }
   0x9   : > { %p1137_p4 = por %p96_p2, %p95_p1  ;;  %s80_s20 = ssub.s32 %s1073_s13, %s1629_s17 }
   0xa   : > { %p693_p6 = scmp.ge.s32.totalorder %s1077_s14, 1  ;;  %p83_p7 = scmp.eq.s32.totalorder %s80_s20, 0 }
   0xb   : > { %p1144_p8 = por %p102_p5, %p101_p3  ;;  %p135_p9 = scmp.lt.s32.totalorder %s1077_s14, 3 }
   0xc   : > { %s1150_s22 = scalar_select %p83_p7, %s1065_s11, %s85_s18  }
   0xd   : > { %p136_p10 = pnand %p693_p6, %p135_p9 }
   0xe   : > { %p161_p11 = scmp.lt.s32.totalorder (!%p136_p10), %s1069_s12, 1  ;;  %s158_s4 = sand.u32 (!%p136_p10), 1, %s1061_s10  }
   0xf   : > { %139 = sbr.rel (%p136_p10) target bundleno = 301 (0x12d), region = 28  ;;  %s694_s5 = sshll.u32 (!%p136_p10), %s158_s4, 4 }
  0x10   : > { %s160_s6 = scalar_lea.vmem (!%p136_p10), [#allocation2], %s694_s5  ;;  %s802_s8 = sshll.u32 (!%p136_p10), %s1069_s12, 8 }
  0x11   : > { %s608_s7 = sshll.u32 (!%p136_p10), %s160_s6, 4  ;;  %s1569_s24 = scalar_lea.hbm (!%p136_p10), %s1620_s2, %s802_s8  ;;  %s1564_s7 = int_to_ptr.vmem [resolvable:$true] %s608_s7 }
  0x12   : > { %s1079_s25 = smov (!%p136_p10), [#allocation2]  }
  0x13   : > { %s1005_s26 = sshll.u32 (!%p136_p10), %s1079_s25, 4  ;;  %s1006_s26 = int_to_ptr.vmem [resolvable:$false] %s1005_s26 }
  0x14   : > { %v202_v0 = vld [vmem:[%s1619_s1 + $0xf8] sm:$0xff]  ;;  %v201_v4 = vld [vmem:[%s1619_s1 + $0xf0] sm:$0xff]  ;;  %v200_v8 = vld [vmem:[%s1619_s1 + $0xe8] sm:$0xff]  ;;  %s1264_s23 = scalar_select %p161_p11, %s1069_s12, 1  ;;  %vm276_vm0 = vcmask 519168  }
  0x15   : > { %v728_v1 = vld [vmem:[%s1619_s1 + $0x1f8] sm:$0xff]  ;;  %803 = vmatprep.subr.mxu0 %v202_v0  ;;  %v727_v5 = vld [vmem:[%s1619_s1 + $0x1f0] sm:$0xff]  ;;  %v726_v9 = vld [vmem:[%s1619_s1 + $0x1e8] sm:$0xff]  ;;  %s1573_s12 = scalar_lea.sflag [#allocation3], %s158_s4  ;;  %s1007_s27 = scalar_lea.vmem %s1006_s26, 512 }
  0x16   : > { %v186_v2 = vld [vmem:[%s1619_s1 + $0x78] sm:$0xff]  ;;  %838 = vmatprep.subr.mxu1 %v728_v1  ;;  %v185_v6 = vld [vmem:[%s1619_s1 + $0x70] sm:$0xff]  ;;  %v184_v10 = vld [vmem:[%s1619_s1 + $0x68] sm:$0xff]  ;;  %s801_s20 = sshll.u32 %s1264_s23, 3  ;;  %p1008_p1 = scmp.lt.s32.totalorder %s1564_s7, %s1006_s26 }
  0x17   : > { %v712_v3 = vld [vmem:[%s1619_s1 + $0x178] sm:$0xff]  ;;  %804 = vmatpush3.msra.mxu0 %v186_v2  ;;  %v711_v7 = vld [vmem:[%s1619_s1 + $0x170] sm:$0xff]  ;;  %v710_v11 = vld [vmem:[%s1619_s1 + $0x168] sm:$0xff]  ;;  %s169_s15 = scalar_lea.vmem %s1618_s0, %s801_s20 }
  0x18   : > { %839 = vmatpush3.msra.mxu1 %v712_v3  ;;  %805 = vmatprep.subr.mxu0 %v201_v4  ;;  %v199_v12 = vld [vmem:[%s1619_s1 + $0xe0] sm:$0xff]  ;;  %v198_v16 = vld [vmem:[%s1619_s1 + $0xd8] sm:$0xff]  ;;  %v197_v20 = vld [vmem:[%s1619_s1 + $0xd0] sm:$0xff] }
  0x19   : > { %840 = vmatprep.subr.mxu1 %v727_v5  ;;  %806 = vmatpush3.msra.mxu0 %v185_v6  ;;  %v725_v13 = vld [vmem:[%s1619_s1 + $0x1e0] sm:$0xff]  ;;  %v724_v17 = vld [vmem:[%s1619_s1 + $0x1d8] sm:$0xff]  ;;  %v723_v21 = vld [vmem:[%s1619_s1 + $0x1d0] sm:$0xff] }
  0x1a   : > { %841 = vmatpush3.msra.mxu1 %v711_v7  ;;  %807 = vmatprep.subr.mxu0 %v200_v8  ;;  %v183_v14 = vld [vmem:[%s1619_s1 + $0x60] sm:$0xff]  ;;  %v182_v18 = vld [vmem:[%s1619_s1 + $0x58] sm:$0xff]  ;;  %v181_v22 = vld [vmem:[%s1619_s1 + $0x50] sm:$0xff] }
  0x1b   : > { %842 = vmatprep.subr.mxu1 %v726_v9  ;;  %v709_v15 = vld [vmem:[%s1619_s1 + $0x160] sm:$0xff]  ;;  %808 = vmatpush3.msra.mxu0 %v184_v10  ;;  %v708_v19 = vld [vmem:[%s1619_s1 + $0x158] sm:$0xff]  ;;  %v707_v23 = vld [vmem:[%s1619_s1 + $0x150] sm:$0xff] }
  0x1c   : > { %843 = vmatpush3.msra.mxu1 %v710_v11  ;;  %809 = vmatprep.subr.mxu0 %v199_v12  ;;  %v196_v24 = vld [vmem:[%s1619_s1 + $0xc8] sm:$0xff]  ;;  %v195_v28 = vld [vmem:[%s1619_s1 + $0xc0] sm:$0xff]  ;;  %v194_v32 = vld [vmem:[%s1619_s1 + $0xb8] sm:$0xff] }
  0x1d   : > { %844 = vmatprep.subr.mxu1 %v725_v13  ;;  %810 = vmatpush3.msra.mxu0 %v183_v14  ;;  %v722_v25 = vld [vmem:[%s1619_s1 + $0x1c8] sm:$0xff]  ;;  %v721_v29 = vld [vmem:[%s1619_s1 + $0x1c0] sm:$0xff]  ;;  %v720_v33 = vld [vmem:[%s1619_s1 + $0x1b8] sm:$0xff] }
  0x1e   : > { %845 = vmatpush3.msra.mxu1 %v709_v15  ;;  %811 = vmatprep.subr.mxu0 %v198_v16  ;;  %v180_v26 = vld [vmem:[%s1619_s1 + $0x48] sm:$0xff]  ;;  %v179_v30 = vld [vmem:[%s1619_s1 + $0x40] sm:$0xff]  ;;  %v178_v34 = vld [vmem:[%s1619_s1 + $0x38] sm:$0xff] }
  0x1f   : > { %846 = vmatprep.subr.mxu1 %v724_v17  ;;  %812 = vmatpush3.msra.mxu0 %v182_v18  ;;  %v706_v27 = vld [vmem:[%s1619_s1 + $0x148] sm:$0xff]  ;;  %v705_v31 = vld [vmem:[%s1619_s1 + $0x140] sm:$0xff]  ;;  %v704_v35 = vld [vmem:[%s1619_s1 + $0x138] sm:$0xff] }
  0x20   : > { %847 = vmatpush3.msra.mxu1 %v708_v19  ;;  %813 = vmatprep.subr.mxu0 %v197_v20  ;;  %v193_v36 = vld [vmem:[%s1619_s1 + $0xb0] sm:$0xff]  ;;  %v192_v40 = vld [vmem:[%s1619_s1 + $0xa8] sm:$0xff]  ;;  %v191_v44 = vld [vmem:[%s1619_s1 + $0xa0] sm:$0xff] }
  0x21   : > { %848 = vmatprep.subr.mxu1 %v723_v21  ;;  %814 = vmatpush3.msra.mxu0 %v181_v22  ;;  %v719_v37 = vld [vmem:[%s1619_s1 + $0x1b0] sm:$0xff]  ;;  %v718_v41 = vld [vmem:[%s1619_s1 + $0x1a8] sm:$0xff]  ;;  %v717_v45 = vld [vmem:[%s1619_s1 + $0x1a0] sm:$0xff] }
  0x22   : > { %849 = vmatpush3.msra.mxu1 %v707_v23  ;;  %815 = vmatprep.subr.mxu0 %v196_v24  ;;  %v177_v38 = vld [vmem:[%s1619_s1 + $0x30] sm:$0xff]  ;;  %v176_v42 = vld [vmem:[%s1619_s1 + $0x28] sm:$0xff]  ;;  %v175_v46 = vld [vmem:[%s1619_s1 + $0x20] sm:$0xff] }
  0x23   : > { %850 = vmatprep.subr.mxu1 %v722_v25  ;;  %816 = vmatpush3.msra.mxu0 %v180_v26  ;;  %v703_v39 = vld [vmem:[%s1619_s1 + $0x130] sm:$0xff]  ;;  %v702_v43 = vld [vmem:[%s1619_s1 + $0x128] sm:$0xff]  ;;  %v701_v47 = vld [vmem:[%s1619_s1 + $0x120] sm:$0xff] }
  0x24   : > { %851 = vmatpush3.msra.mxu1 %v706_v27  ;;  %817 = vmatprep.subr.mxu0 %v195_v28  ;;  %v190_v48 = vld [vmem:[%s1619_s1 + $0x98] sm:$0xff]  ;;  %v189_v52 = vld [vmem:[%s1619_s1 + $0x90] sm:$0xff]  ;;  %v1330_v56 = vld [vmem:[%s169_s15] sm:$0xff]  ;;  %s1001_s15 = scalar_lea.vmem %s1564_s7, 256 }
  0x25   : > { %852 = vmatprep.subr.mxu1 %v721_v29  ;;  %818 = vmatpush3.msra.mxu0 %v179_v30  ;;  %v716_v49 = vld [vmem:[%s1619_s1 + $0x198] sm:$0xff]  ;;  %v715_v53 = vld [vmem:[%s1619_s1 + $0x190] sm:$0xff]  ;;  %v188_v57 = vld [vmem:[%s1619_s1 + $0x88] sm:$0xff]  ;;  %v1352_v63 = vcombine.high %v1330_v56, %v1330_v56  ;;  %p1002_p12 = scmp.ne.s32.totalorder %s1564_s7, %s1001_s15  ;;  %p1009_p2 = scmp.lt.s32.totalorder %s1007_s27, %s1001_s15 }
  0x26   : > { %853 = vmatpush3.msra.mxu1 %v705_v31  ;;  %819 = vmatprep.subr.mxu0 %v194_v32  ;;  %v174_v50 = vld [vmem:[%s1619_s1 + $0x18] sm:$0xff]  ;;  %v173_v54 = vld [vmem:[%s1619_s1 + $0x10] sm:$0xff]  ;;  %v714_v58 = vld [vmem:[%s1619_s1 + $0x188] sm:$0xff] }
  0x27   : > { %854 = vmatprep.subr.mxu1 %v720_v33  ;;  %820 = vmatpush3.msra.mxu0 %v178_v34  ;;  %v700_v51 = vld [vmem:[%s1619_s1 + $0x118] sm:$0xff]  ;;  %v699_v55 = vld [vmem:[%s1619_s1 + $0x110] sm:$0xff]  ;;  %v172_v59 = vld [vmem:[%s1619_s1 + $0x8] sm:$0xff]  ;;  %p1003_p13 = pnand %p1002_p12, %p1137_p4  ;;  %p1010_p3 = por %p1009_p2, %p1008_p1 }
  0x28   : > { %855 = vmatpush3.msra.mxu1 %v704_v35  ;;  %821 = vmatprep.subr.mxu0 %v193_v36  ;;  %v698_v60 = vld [vmem:[%s1619_s1 + $0x108] sm:$0xff]  ;;  %v187_v61 = vld [vmem:[%s1619_s1 + $0x80] sm:$0xff]  ;;  %v761_v2 = vld [vmem:[%s1619_s1 + $0x2f8] sm:$0xff] }
  0x29   : > { %856 = vmatprep.subr.mxu1 %v719_v37  ;;  %822 = vmatpush3.msra.mxu0 %v177_v38  ;;  %v713_v62 = vld [vmem:[%s1619_s1 + $0x180] sm:$0xff]  ;;  %v794_v3 = vld [vmem:[%s1619_s1 + $0x3f8] sm:$0xff]  ;;  %v760_v6 = vld [vmem:[%s1619_s1 + $0x2f0] sm:$0xff]  ;;  %p1004_p0 = pneg %p1003_p13 }
  0x2a   : > { %857 = vmatpush3.msra.mxu1 %v703_v39  ;;  %823 = vmatprep.subr.mxu0 %v192_v40  ;;  %v171_v0 = vld [vmem:[%s1619_s1] sm:$0xff]  ;;  %v745_v4 = vld [vmem:[%s1619_s1 + $0x278] sm:$0xff]  ;;  %v793_v7 = vld [vmem:[%s1619_s1 + $0x3f0] sm:$0xff] }
  0x2b   : > { %858 = vmatprep.subr.mxu1 %v718_v41  ;;  %824 = vmatpush3.msra.mxu0 %v176_v42  ;;  %v697_v1 = vld [vmem:[%s1619_s1 + $0x100] sm:$0xff]  ;;  %v778_v5 = vld [vmem:[%s1619_s1 + $0x378] sm:$0xff]  ;;  %v744_v8 = vld [vmem:[%s1619_s1 + $0x270] sm:$0xff]  ;;  %p1011_p5 = pnand %p1010_p3, %p1004_p0 }
  0x2c   : > { %859 = vmatpush3.msra.mxu1 %v702_v43  ;;  %825 = vmatprep.subr.mxu0 %v191_v44  ;;  %v777_v9 = vld [vmem:[%s1619_s1 + $0x370] sm:$0xff]  ;;  %v759_v10 = vld [vmem:[%s1619_s1 + $0x2e8] sm:$0xff]  ;;  %v758_v14 = vld [vmem:[%s1619_s1 + $0x2e0] sm:$0xff] }
  0x2d   : > { %860 = vmatprep.subr.mxu1 %v717_v45  ;;  %826 = vmatpush3.msra.mxu0 %v175_v46  ;;  %v792_v11 = vld [vmem:[%s1619_s1 + $0x3e8] sm:$0xff]  ;;  %v791_v15 = vld [vmem:[%s1619_s1 + $0x3e0] sm:$0xff]  ;;  %v757_v18 = vld [vmem:[%s1619_s1 + $0x2d8] sm:$0xff] }
  0x2e   : > { %861 = vmatpush3.msra.mxu1 %v701_v47  ;;  %827 = vmatprep.subr.mxu0 %v190_v48  ;;  %v743_v12 = vld [vmem:[%s1619_s1 + $0x268] sm:$0xff]  ;;  %v742_v16 = vld [vmem:[%s1619_s1 + $0x260] sm:$0xff]  ;;  %v790_v19 = vld [vmem:[%s1619_s1 + $0x3d8] sm:$0xff] }
  0x2f   : > { %862 = vmatprep.subr.mxu1 %v716_v49  ;;  %828 = vmatpush3.msra.mxu0 %v174_v50  ;;  %v776_v13 = vld [vmem:[%s1619_s1 + $0x368] sm:$0xff]  ;;  %v775_v17 = vld [vmem:[%s1619_s1 + $0x360] sm:$0xff]  ;;  %v741_v20 = vld [vmem:[%s1619_s1 + $0x258] sm:$0xff] }
  0x30   : > { %863 = vmatpush3.msra.mxu1 %v700_v51  ;;  %829 = vmatprep.subr.mxu0 %v189_v52  ;;  %v774_v21 = vld [vmem:[%s1619_s1 + $0x358] sm:$0xff]  ;;  %v756_v22 = vld [vmem:[%s1619_s1 + $0x2d0] sm:$0xff]  ;;  %v755_v26 = vld [vmem:[%s1619_s1 + $0x2c8] sm:$0xff] }
  0x31   : > { %864 = vmatprep.subr.mxu1 %v715_v53  ;;  %830 = vmatpush3.msra.mxu0 %v173_v54  ;;  %v789_v23 = vld [vmem:[%s1619_s1 + $0x3d0] sm:$0xff]  ;;  %v788_v27 = vld [vmem:[%s1619_s1 + $0x3c8] sm:$0xff]  ;;  %v754_v30 = vld [vmem:[%s1619_s1 + $0x2c0] sm:$0xff] }
  0x32   : > { %865 = vmatpush3.msra.mxu1 %v699_v55  ;;  %831 = vmatprep.subr.mxu0 %v188_v57  ;;  %v740_v24 = vld [vmem:[%s1619_s1 + $0x250] sm:$0xff]  ;;  %v739_v28 = vld [vmem:[%s1619_s1 + $0x248] sm:$0xff]  ;;  %v787_v31 = vld [vmem:[%s1619_s1 + $0x3c0] sm:$0xff] }
  0x33   : > { %866 = vmatprep.subr.mxu1 %v714_v58  ;;  %832 = vmatpush3.msra.mxu0 %v172_v59  ;;  %v773_v25 = vld [vmem:[%s1619_s1 + $0x350] sm:$0xff]  ;;  %v772_v29 = vld [vmem:[%s1619_s1 + $0x348] sm:$0xff]  ;;  %v738_v32 = vld [vmem:[%s1619_s1 + $0x240] sm:$0xff] }
  0x34   : > { %867 = vmatpush3.msra.mxu1 %v698_v60  ;;  %833 = vmatprep.subr.mxu0 %v187_v61  ;;  %v771_v33 = vld [vmem:[%s1619_s1 + $0x340] sm:$0xff]  ;;  %v753_v34 = vld [vmem:[%s1619_s1 + $0x2b8] sm:$0xff]  ;;  %v752_v38 = vld [vmem:[%s1619_s1 + $0x2b0] sm:$0xff] }
  0x35   : > { %868 = vmatprep.subr.mxu1 %v713_v62  ;;  %834 = vmatpush3.msra.mxu0 %v171_v0  ;;  %v786_v35 = vld [vmem:[%s1619_s1 + $0x3b8] sm:$0xff]  ;;  %v785_v39 = vld [vmem:[%s1619_s1 + $0x3b0] sm:$0xff]  ;;  %v751_v42 = vld [vmem:[%s1619_s1 + $0x2a8] sm:$0xff] }
  0x36   : > { %270 = vmatprep.mubr.f32.mxu0 %v1352_v63  ;;  %869 = vmatpush3.msra.mxu1 %v697_v1  ;;  %v737_v36 = vld [vmem:[%s1619_s1 + $0x238] sm:$0xff]  ;;  %v736_v40 = vld [vmem:[%s1619_s1 + $0x230] sm:$0xff]  ;;  %v784_v43 = vld [vmem:[%s1619_s1 + $0x3a8] sm:$0xff] }
  0x37   : > { %375 = vmatprep.mubr.f32.mxu1 %v1352_v63  ;;  %271 = vmatmul.mubr.f32.vlgmr.msra.gmra.mxu0 %v1330_v56  ;;  %v770_v37 = vld [vmem:[%s1619_s1 + $0x338] sm:$0xff]  ;;  %v769_v41 = vld [vmem:[%s1619_s1 + $0x330] sm:$0xff]  ;;  %v735_v44 = vld [vmem:[%s1619_s1 + $0x228] sm:$0xff] }
  0x38   : > { %376 = vmatmul.mubr.f32.vlgmr.msra.gmra.mxu1 %v1330_v56  ;;  %873 = vmatprep.subr.mxu0 %v761_v2  ;;  %v768_v45 = vld [vmem:[%s1619_s1 + $0x328] sm:$0xff]  ;;  %v750_v46 = vld [vmem:[%s1619_s1 + $0x2a0] sm:$0xff]  ;;  %v749_v50 = vld [vmem:[%s1619_s1 + $0x298] sm:$0xff] }
  0x39   : > { %908 = vmatprep.subr.mxu1 %v794_v3  ;;  %874 = vmatpush3.msra.mxu0 %v745_v4  ;;  %v783_v47 = vld [vmem:[%s1619_s1 + $0x3a0] sm:$0xff]  ;;  %v782_v51 = vld [vmem:[%s1619_s1 + $0x398] sm:$0xff]  ;;  %v748_v54 = vld [vmem:[%s1619_s1 + $0x290] sm:$0xff] }
  0x3a   : > { %909 = vmatpush3.msra.mxu1 %v778_v5  ;;  %875 = vmatprep.subr.mxu0 %v760_v6  ;;  %v734_v48 = vld [vmem:[%s1619_s1 + $0x220] sm:$0xff]  ;;  %v733_v52 = vld [vmem:[%s1619_s1 + $0x218] sm:$0xff]  ;;  %v781_v55 = vld [vmem:[%s1619_s1 + $0x390] sm:$0xff] }
  0x3b   : > { %910 = vmatprep.subr.mxu1 %v793_v7  ;;  %876 = vmatpush3.msra.mxu0 %v744_v8  ;;  %v767_v49 = vld [vmem:[%s1619_s1 + $0x320] sm:$0xff]  ;;  %v766_v53 = vld [vmem:[%s1619_s1 + $0x318] sm:$0xff]  ;;  %v732_v57 = vld [vmem:[%s1619_s1 + $0x210] sm:$0xff] }
  0x3c   : > { %911 = vmatpush3.msra.mxu1 %v777_v9  ;;  %877 = vmatprep.subr.mxu0 %v759_v10  ;;  %v765_v58 = vld [vmem:[%s1619_s1 + $0x310] sm:$0xff]  ;;  %v747_v59 = vld [vmem:[%s1619_s1 + $0x288] sm:$0xff]  ;;  %v746_v0 = vld [vmem:[%s1619_s1 + $0x280] sm:$0xff] }
  0x3d   : > { %912 = vmatprep.subr.mxu1 %v792_v11  ;;  %878 = vmatpush3.msra.mxu0 %v743_v12  ;;  %v780_v60 = vld [vmem:[%s1619_s1 + $0x388] sm:$0xff]  ;;  %v779_v1 = vld [vmem:[%s1619_s1 + $0x380] sm:$0xff] }
  0x3e   : > { %913 = vmatpush3.msra.mxu1 %v776_v13  ;;  %879 = vmatprep.subr.mxu0 %v758_v14  ;;  %v731_v61 = vld [vmem:[%s1619_s1 + $0x208] sm:$0xff]  ;;  %v730_v2 = vld [vmem:[%s1619_s1 + $0x200] sm:$0xff] }
  0x3f   : > { %914 = vmatprep.subr.mxu1 %v791_v15  ;;  %880 = vmatpush3.msra.mxu0 %v742_v16  ;;  %v764_v62 = vld [vmem:[%s1619_s1 + $0x308] sm:$0xff]  ;;  %v763_v3 = vld [vmem:[%s1619_s1 + $0x300] sm:$0xff] }
  0x40   : > { %915 = vmatpush3.msra.mxu1 %v775_v17  ;;  %881 = vmatprep.subr.mxu0 %v757_v18 }
  0x41   : > { %916 = vmatprep.subr.mxu1 %v790_v19  ;;  %882 = vmatpush3.msra.mxu0 %v741_v20 }
  0x42   : > { %917 = vmatpush3.msra.mxu1 %v774_v21  ;;  %883 = vmatprep.subr.mxu0 %v756_v22 }
  0x43   : > { %918 = vmatprep.subr.mxu1 %v789_v23  ;;  %884 = vmatpush3.msra.mxu0 %v740_v24 }
  0x44   : > { %919 = vmatpush3.msra.mxu1 %v773_v25  ;;  %885 = vmatprep.subr.mxu0 %v755_v26 }
  0x45   : > { %920 = vmatprep.subr.mxu1 %v788_v27  ;;  %886 = vmatpush3.msra.mxu0 %v739_v28 }
  0x46   : > { %921 = vmatpush3.msra.mxu1 %v772_v29  ;;  %887 = vmatprep.subr.mxu0 %v754_v30 }
  0x47   : > { %922 = vmatprep.subr.mxu1 %v787_v31  ;;  %888 = vmatpush3.msra.mxu0 %v738_v32 }
  0x48   : > { %923 = vmatpush3.msra.mxu1 %v771_v33  ;;  %889 = vmatprep.subr.mxu0 %v753_v34 }
  0x49   : > { %924 = vmatprep.subr.mxu1 %v786_v35  ;;  %890 = vmatpush3.msra.mxu0 %v737_v36 }
  0x4a   : > { %925 = vmatpush3.msra.mxu1 %v770_v37  ;;  %891 = vmatprep.subr.mxu0 %v752_v38 }
  0x4b   : > { %926 = vmatprep.subr.mxu1 %v785_v39  ;;  %892 = vmatpush3.msra.mxu0 %v736_v40 }
  0x4c   : > { %927 = vmatpush3.msra.mxu1 %v769_v41  ;;  %893 = vmatprep.subr.mxu0 %v751_v42 }
  0x4d   : > { %928 = vmatprep.subr.mxu1 %v784_v43  ;;  %894 = vmatpush3.msra.mxu0 %v735_v44 }
  0x4e   : > { %929 = vmatpush3.msra.mxu1 %v768_v45  ;;  %895 = vmatprep.subr.mxu0 %v750_v46 }
  0x4f   : > { %930 = vmatprep.subr.mxu1 %v783_v47  ;;  %896 = vmatpush3.msra.mxu0 %v734_v48 }
  0x50   : > { %931 = vmatpush3.msra.mxu1 %v767_v49  ;;  %897 = vmatprep.subr.mxu0 %v749_v50 }
  0x51   : > { %932 = vmatprep.subr.mxu1 %v782_v51  ;;  %898 = vmatpush3.msra.mxu0 %v733_v52 }
  0x52   : > { %933 = vmatpush3.msra.mxu1 %v766_v53  ;;  %899 = vmatprep.subr.mxu0 %v748_v54 }
  0x53   : > { %934 = vmatprep.subr.mxu1 %v781_v55  ;;  %900 = vmatpush3.msra.mxu0 %v732_v57 }
  0x54   : > { %935 = vmatpush3.msra.mxu1 %v765_v58  ;;  %901 = vmatprep.subr.mxu0 %v747_v59 }
  0x55   : > { %936 = vmatprep.subr.mxu1 %v780_v60  ;;  %902 = vmatpush3.msra.mxu0 %v731_v61 }
  0x56   : > { %937 = vmatpush3.msra.mxu1 %v764_v62  ;;  %903 = vmatprep.subr.mxu0 %v746_v0 }
  0x57   : > { %938 = vmatprep.subr.mxu1 %v779_v1  ;;  %904 = vmatpush3.msra.mxu0 %v730_v2 }
  0x58   : > { %480 = vmatprep.mubr.f32.mxu0 %v1352_v63  ;;  %939 = vmatpush3.msra.mxu1 %v763_v3 }
  0x59   : > { %585 = vmatprep.mubr.f32.mxu1 %v1352_v63  ;;  %481 = vmatmul.mubr.f32.vlgmr.msra.gmra.mxu0 %v1330_v56 }
  0x5a   : > { %586 = vmatmul.mubr.f32.vlgmr.msra.gmra.mxu1 %v1330_v56 }
  0xf7   : > { %v835_v4 = vpop.f32.mrf.mxu0 }
  0xf8   : > { %v870_v5 = vpop.f32.mrf.mxu1 }
  0xf9   : > { %v836_v6 = vpop.f32.mrf.mxu0 }
  0xfa   : > { %v871_v7 = vpop.f32.mrf.mxu1  ;;  %v837_v8 = vadd.f32 %v836_v6, %v835_v4 }
  0xfb   : > { %v872_v9 = vadd.f32 %v871_v7, %v870_v5 }
  0xfc   : > { %277 = vst.msk [vmem:[%s160_s6] sm:$0xf] %vm276_vm0, %v837_v8 }
  0xfd   : > { %729 = vst.msk [vmem:[%s160_s6 + $0x4] sm:$0xf] %vm276_vm0, %v872_v9 }
 0x119   : > { %v905_v63 = vpop.f32.mrf.mxu0 }
 0x11a   : > { %v940_v10 = vpop.f32.mrf.mxu1 }
 0x11b   : > { %v906_v56 = vpop.f32.mrf.mxu0 }
 0x11c   : > { %v941_v11 = vpop.f32.mrf.mxu1  ;;  %v907_v12 = vadd.f32 %v906_v56, %v905_v63 }
 0x11d   : > { %v942_v13 = vadd.f32 %v941_v11, %v940_v10 }
 0x11e   : > { %762 = vst.msk [vmem:[%s160_s6 + $0x8] sm:$0xf] %vm276_vm0, %v907_v12 }
 0x11f   : > { %795 = vst.msk [vmem:[%s160_s6 + $0xc] sm:$0xf] %vm276_vm0, %v942_v13 }
 0x120   : > { %1014 = shalt.err (!%p1011_p5)
}
 0x121   : > { %s1015_s28 = scalar_lea.hbm %s1569_s24, 256  ;;  %s1019_s30 = scalar_lea.hbm %s1620_s2, 512 }
 0x122   : > { %p1016_p6 = scmp.ne.s32.totalorder %s1569_s24, %s1015_s28  ;;  %p1020_p10 = scmp.lt.s32.totalorder %s1569_s24, %s1620_s2 }
 0x123   : > { %p1021_p11 = scmp.lt.s32.totalorder %s1019_s30, %s1015_s28 }
 0x124   : > { %p1017_p7 = pnand %p1016_p6, %p1137_p4 }
 0x125   : > { %p1022_p12 = por %p1021_p11, %p1020_p10 }
 0x126   : > { %p1018_p9 = pneg %p1017_p7 }
 0x128   : > { %p1023_p13 = pnand %p1022_p12, %p1018_p9 }
 0x12a   : > { %1026 = shalt.err (!%p1023_p13)
}
 0x12b   : > { %s1080_s4 = smov 64   ;;  %s1081_s5 = smov 4  }
 0x12c   : > { %943 = dma.vmem_to_hbm [thread:$0]  (%p1137_p4), %s1564_s7, 256, %s1569_s24, %s1573_s12, %s1080_s4, %s1080_s4, %s1081_s5  }
 0x12d PF: > { %p949_p0 = scmp.ge.s32.totalorder %s1077_s14, 2  ;;  %s623_s6 = sand.u32 1, %s1057_s9  }
 0x12e   : > { %s624_s8 = scalar_lea.sflag [#allocation3], %s623_s6 }
 0x12f   : > { %p946_p1 = pnand %p949_p0, %p1144_p8 }
 0x131   : > { %p947_p2 = pneg %p946_p1 }
 0x133   : > { %1052 = dma.done.wait (%p947_p2), %s624_s8, 256  }
 0x134   : > { %1054 = vsyncadd (%p947_p2), %s624_s8, 4294967040  ;;  %s15_s14 = sadd.s32 1, %s1077_s14   ;;  %s1623_s9 = smov %s1061_s10 }
 0x135   : > { %p12_p3 = scmp.ge.s32.totalorder %s15_s14, 4   ;;  %s1624_s10 = smov %s1065_s11 }
 0x136   : > { %s1625_s11 = smov %s1150_s22  ;;  %s1626_s12 = smov %s1073_s13 }
 0x137   : > { %s1627_s13 = smov %s1629_s17  ;;  %14 = sbr.rel (!%p12_p3) target bundleno = 4 (0x4), region = 69 }
 0x13c   :  { %629 = vsyncpa [#allocation3], 1 }
 0x13d   :  { %631 = vsyncpa [#allocation3 + $0x1], 1 }

</bundles_post_ra>
